<compile_context>
chip_gen: v7x
topology: tpu7x:2x2x1
jax: 0.10.0
libtpu: 0.0.40
codegen_flags: <defaults>
</compile_context>

<pallas_src>
import jax
import jax.numpy as jnp
from jax import lax
from jax.experimental import pallas as pl
from jax.experimental.pallas import tpu as pltpu


# ------------------------------ fused kernel ------------------------------

def rcnn_kernel(x_ref, wih_ref, whh_ref, b_ref, wconv_ref, o_ref):
    """One grid program = one full RCNN forward on a (T, N, H) problem.

    x_ref:     (T, N, H)    input sequence (RNN recurses over T, conv slides over N)
    wih_ref:   (H, H)       W_ih^T  (stored (in, out))
    whh_ref:   (H, H)       W_hh^T
    b_ref:     (1, H)       b_ih + b_hh
    wconv_ref: (K, H, 2*H)  per-tap [conv | gate] matrices, (in, out) layout
    o_ref:     (T, N, H)    output
    """
    T, N, H = x_ref.shape
    K = wconv_ref.shape[0]
    PAD = (K - 1) // 2
    f32 = jnp.float32

    wih = wih_ref[...]
    whh = whh_ref[...]

    # ---- 1) input projection for ALL timesteps, bias folded in once (off the
    #         serial path).
    x_all = x_ref[...].reshape(T * N, H).astype(f32)
    xw = jnp.dot(x_all, wih, preferred_element_type=f32) + b_ref[...]      # (T*N, H)

    # ---- 2) serial tanh recurrence: one small dot + tanh per step.
    h = jnp.zeros((N, H), f32)
    hs = []
    for t in range(T):                                   # static unroll (T small)
        h = jnp.tanh(xw[t * N:(t + 1) * N, :]
                     + jnp.dot(h, whh, preferred_element_type=f32))
        hs.append(h)
    y = jnp.concatenate(hs, axis=0)                      # (T*N, H), 16-row aligned pieces

    # ---- 3) gated "same" Conv1d over the N axis of every timestep, as K
    #         accumulated dots on rolled inputs (roll = XLU, edge fix = one select).
    n_idx = lax.broadcasted_iota(jnp.int32, (T, N, H), 1).reshape(T * N, H)

    def tap_input(d):
        # s[row=(t,n)] = y[t, n + d], zero where n + d is out of [0, N-1].
        if d == 0:
            return y
        s = pltpu.roll(y, shift=(-d) % (T * N), axis=0)  # s[i] = y[i + d]
        if d < 0:
            return jnp.where(n_idx >= -d, s, 0.0)
        return jnp.where(n_idx <= N - 1 - d, s, 0.0)

    ab = jnp.zeros((T * N, 2 * H), f32)
    for k in range(K):                                   # K partial products accumulate
        ab = ab + jnp.dot(tap_input(k - PAD), wconv_ref[k],
                          preferred_element_type=f32)    # (T*N, 2H)

    a = ab[:, :H]
    g = ab[:, H:]
    sig = 1.0 / (1.0 + jnp.exp(-g))                      # exact sigmoid
    out = a * sig

    # ---- 4) one full-block store.
    o_ref[...] = out.reshape(T, N, H).astype(o_ref.dtype)


# ------------------------------ wrapper ------------------------------

def rcnn_forward(x, w_ih, w_hh, b_ih, b_hh, cnn_w, gate_w):
    """x: (B, T, N, H) — B independent sequences, each run through RCNN.forward.
    RNN weights in torch layout (H_out, H_in); Conv1d weights (H_out, H_in, K).
    Returns (B, T, N, H)."""
    B, T, N, H = x.shape
    K = cnn_w.shape[-1]

    wih_t = jnp.transpose(w_ih)                          # (H_in, H_out)
    whh_t = jnp.transpose(w_hh)
    b = (b_ih + b_hh).reshape(1, H)

    # (K, H_in, 2*H): tap-k matrices for the fused [conv | gate] projection.
    wconv = jnp.concatenate(
        [jnp.transpose(cnn_w, (2, 1, 0)), jnp.transpose(gate_w, (2, 1, 0))],
        axis=-1)

    return pl.pallas_call(
        rcnn_kernel,
        out_shape=jax.ShapeDtypeStruct((B, T, N, H), x.dtype),
        grid=(B,),
        in_specs=[
            pl.BlockSpec((None, T, N, H), lambda bi: (bi, 0, 0, 0)),
            pl.BlockSpec((H, H), lambda bi: (0, 0)),
            pl.BlockSpec((H, H), lambda bi: (0, 0)),
            pl.BlockSpec((1, H), lambda bi: (0, 0)),
            pl.BlockSpec((K, H, 2 * H), lambda bi: (0, 0, 0)),
        ],
        out_specs=pl.BlockSpec((None, T, N, H), lambda bi: (bi, 0, 0, 0)),
        compiler_params=pltpu.CompilerParams(
            dimension_semantics=("parallel",)),
    )(x, wih_t, whh_t, b, wconv)


# ------------------------------ pure-JAX reference ------------------------------

def rcnn_reference(x, w_ih, w_hh, b_ih, b_hh, cnn_w, gate_w):
    pad = (cnn_w.shape[-1] - 1) // 2

    def single(x3):                                      # x3: (T, N, H)
        T, N, H = x3.shape

        def step(h, xt):
            h = jnp.tanh(xt @ w_ih.T + b_ih + h @ w_hh.T + b_hh)
            return h, h

        _, y = lax.scan(step, jnp.zeros((N, H), jnp.float32), x3)   # (T, N, H)

        def conv(z, w):                                  # channels-last conv1d over N
            return lax.conv_general_dilated(
                z, jnp.transpose(w, (2, 1, 0)),          # (K, Hin, Hout)
                window_strides=(1,), padding=[(pad, pad)],
                dimension_numbers=("NWC", "WIO", "NWC"))

        a = conv(y, cnn_w)
        g = conv(y, gate_w)
        return a * jax.nn.sigmoid(g)

    return jax.vmap(single)(x)


# ------------------------------ main ------------------------------

if __name__ == "__main__":
    B, T, N, H, K = 4, 8, 16, 32, 3                      # seq=8, batch=16, hidden=32

    key = jax.random.PRNGKey(0)
    ks = jax.random.split(key, 7)
    bound = 1.0 / (H ** 0.5)

    x = jax.random.normal(ks[0], (B, T, N, H), jnp.float32)
    w_ih = jax.random.uniform(ks[1], (H, H), jnp.float32, -bound, bound)
    w_hh = jax.random.uniform(ks[2], (H, H), jnp.float32, -bound, bound)
    b_ih = jax.random.uniform(ks[3], (H,), jnp.float32, -bound, bound)
    b_hh = jax.random.uniform(ks[4], (H,), jnp.float32, -bound, bound)
    cnn_w = jax.random.uniform(ks[5], (H, H, K), jnp.float32, -bound, bound)
    gate_w = jax.random.uniform(ks[6], (H, H, K), jnp.float32, -bound, bound)

    out = jax.block_until_ready(
        rcnn_forward(x, w_ih, w_hh, b_ih, b_hh, cnn_w, gate_w))
    assert out.shape == (B, T, N, H) and out.dtype == jnp.float32

    ref = jax.block_until_ready(
        rcnn_reference(x, w_ih, w_hh, b_ih, b_hh, cnn_w, gate_w))
    err = float(jnp.max(jnp.abs(out - ref)))
    assert err < 1e-3, f"max abs diff vs reference: {err}"

    print("KERNEL_OK")
</pallas_src>

<mosaic_0001>
module attributes {stable_mosaic.version = 11 : i64} {
  func.func @rcnn_kernel(%arg0: i32, %arg1: memref<1x8x16x32xf32, #tpu.memory_space<vmem>>, %arg2: memref<32x32xf32, #tpu.memory_space<vmem>>, %arg3: memref<32x32xf32, #tpu.memory_space<vmem>>, %arg4: memref<1x32xf32, #tpu.memory_space<vmem>>, %arg5: memref<3x32x64xf32, #tpu.memory_space<vmem>>, %arg6: memref<1x8x16x32xf32, #tpu.memory_space<vmem>>) attributes {dimension_semantics = [#tpu.dimension_semantics<parallel>], iteration_bounds = array<i64: 4>, scalar_prefetch = 0 : i64, scratch_operands = 0 : i64, tpu.core_type = #tpu.core_type<tc>, window_params = [{transform_indices = @transform_0, window_bounds = array<i64: 1, 8, 16, 32>}, {pipeline_mode = #tpu.pipeline_mode<synchronous>, transform_indices = @transform_1, window_bounds = array<i64: 32, 32>}, {pipeline_mode = #tpu.pipeline_mode<synchronous>, transform_indices = @transform_2, window_bounds = array<i64: 32, 32>}, {pipeline_mode = #tpu.pipeline_mode<synchronous>, transform_indices = @transform_3, window_bounds = array<i64: 1, 32>}, {pipeline_mode = #tpu.pipeline_mode<synchronous>, transform_indices = @transform_4, window_bounds = array<i64: 3, 32, 64>}, {transform_indices = @transform_5, window_bounds = array<i64: 1, 8, 16, 32>}]} {
    %c0 = arith.constant 0 : index
    %c0_0 = arith.constant 0 : index
    %0 = vector.load %arg2[%c0, %c0_0] : memref<32x32xf32, #tpu.memory_space<vmem>>, vector<32x32xf32>
    %c0_1 = arith.constant 0 : index
    %c0_2 = arith.constant 0 : index
    %1 = vector.load %arg3[%c0_1, %c0_2] : memref<32x32xf32, #tpu.memory_space<vmem>>, vector<32x32xf32>
    %c0_3 = arith.constant 0 : index
    %c0_4 = arith.constant 0 : index
    %c0_5 = arith.constant 0 : index
    %c0_6 = arith.constant 0 : index
    %2 = vector.load %arg1[%c0_3, %c0_4, %c0_5, %c0_6] : memref<1x8x16x32xf32, #tpu.memory_space<vmem>>, vector<1x8x16x32xf32>
    %3 = vector.shape_cast %2 : vector<1x8x16x32xf32> to vector<8x16x32xf32>
    %4 = vector.shape_cast %3 : vector<8x16x32xf32> to vector<128x32xf32>
    %cst = arith.constant dense<0.000000e+00> : vector<128x32xf32>
    %5 = tpu.matmul %4, %0, %cst {dimension_numbers = #tpu.dot_dimension_numbers<[1], [0], [0], [1], [0, 0, 1, 1], [], []>} : vector<128x32xf32>, vector<32x32xf32>, vector<128x32xf32> -> vector<128x32xf32>
    %c0_7 = arith.constant 0 : index
    %c0_8 = arith.constant 0 : index
    %6 = vector.load %arg4[%c0_7, %c0_8] : memref<1x32xf32, #tpu.memory_space<vmem>>, vector<1x32xf32>
    %7 = vector.broadcast %6 : vector<1x32xf32> to vector<128x32xf32>
    %8 = arith.addf %5, %7 : vector<128x32xf32>
    %cst_9 = arith.constant 0.000000e+00 : f32
    %9 = vector.broadcast %cst_9 : f32 to vector<16x32xf32>
    %10 = vector.extract_strided_slice %8 {offsets = [0, 0], sizes = [16, 32], strides = [1, 1]} : vector<128x32xf32> to vector<16x32xf32>
    %cst_10 = arith.constant dense<0.000000e+00> : vector<16x32xf32>
    %11 = tpu.matmul %9, %1, %cst_10 {dimension_numbers = #tpu.dot_dimension_numbers<[1], [0], [0], [1], [0, 0, 1, 1], [], []>} : vector<16x32xf32>, vector<32x32xf32>, vector<16x32xf32> -> vector<16x32xf32>
    %12 = arith.addf %10, %11 : vector<16x32xf32>
    %13 = math.tanh %12 : vector<16x32xf32>
    %14 = vector.extract_strided_slice %8 {offsets = [16, 0], sizes = [16, 32], strides = [1, 1]} : vector<128x32xf32> to vector<16x32xf32>
    %cst_11 = arith.constant dense<0.000000e+00> : vector<16x32xf32>
    %15 = tpu.matmul %13, %1, %cst_11 {dimension_numbers = #tpu.dot_dimension_numbers<[1], [0], [0], [1], [0, 0, 1, 1], [], []>} : vector<16x32xf32>, vector<32x32xf32>, vector<16x32xf32> -> vector<16x32xf32>
    %16 = arith.addf %14, %15 : vector<16x32xf32>
    %17 = math.tanh %16 : vector<16x32xf32>
    %18 = vector.extract_strided_slice %8 {offsets = [32, 0], sizes = [16, 32], strides = [1, 1]} : vector<128x32xf32> to vector<16x32xf32>
    %cst_12 = arith.constant dense<0.000000e+00> : vector<16x32xf32>
    %19 = tpu.matmul %17, %1, %cst_12 {dimension_numbers = #tpu.dot_dimension_numbers<[1], [0], [0], [1], [0, 0, 1, 1], [], []>} : vector<16x32xf32>, vector<32x32xf32>, vector<16x32xf32> -> vector<16x32xf32>
    %20 = arith.addf %18, %19 : vector<16x32xf32>
    %21 = math.tanh %20 : vector<16x32xf32>
    %22 = vector.extract_strided_slice %8 {offsets = [48, 0], sizes = [16, 32], strides = [1, 1]} : vector<128x32xf32> to vector<16x32xf32>
    %cst_13 = arith.constant dense<0.000000e+00> : vector<16x32xf32>
    %23 = tpu.matmul %21, %1, %cst_13 {dimension_numbers = #tpu.dot_dimension_numbers<[1], [0], [0], [1], [0, 0, 1, 1], [], []>} : vector<16x32xf32>, vector<32x32xf32>, vector<16x32xf32> -> vector<16x32xf32>
    %24 = arith.addf %22, %23 : vector<16x32xf32>
    %25 = math.tanh %24 : vector<16x32xf32>
    %26 = vector.extract_strided_slice %8 {offsets = [64, 0], sizes = [16, 32], strides = [1, 1]} : vector<128x32xf32> to vector<16x32xf32>
    %cst_14 = arith.constant dense<0.000000e+00> : vector<16x32xf32>
    %27 = tpu.matmul %25, %1, %cst_14 {dimension_numbers = #tpu.dot_dimension_numbers<[1], [0], [0], [1], [0, 0, 1, 1], [], []>} : vector<16x32xf32>, vector<32x32xf32>, vector<16x32xf32> -> vector<16x32xf32>
    %28 = arith.addf %26, %27 : vector<16x32xf32>
    %29 = math.tanh %28 : vector<16x32xf32>
    %30 = vector.extract_strided_slice %8 {offsets = [80, 0], sizes = [16, 32], strides = [1, 1]} : vector<128x32xf32> to vector<16x32xf32>
    %cst_15 = arith.constant dense<0.000000e+00> : vector<16x32xf32>
    %31 = tpu.matmul %29, %1, %cst_15 {dimension_numbers = #tpu.dot_dimension_numbers<[1], [0], [0], [1], [0, 0, 1, 1], [], []>} : vector<16x32xf32>, vector<32x32xf32>, vector<16x32xf32> -> vector<16x32xf32>
    %32 = arith.addf %30, %31 : vector<16x32xf32>
    %33 = math.tanh %32 : vector<16x32xf32>
    %34 = vector.extract_strided_slice %8 {offsets = [96, 0], sizes = [16, 32], strides = [1, 1]} : vector<128x32xf32> to vector<16x32xf32>
    %cst_16 = arith.constant dense<0.000000e+00> : vector<16x32xf32>
    %35 = tpu.matmul %33, %1, %cst_16 {dimension_numbers = #tpu.dot_dimension_numbers<[1], [0], [0], [1], [0, 0, 1, 1], [], []>} : vector<16x32xf32>, vector<32x32xf32>, vector<16x32xf32> -> vector<16x32xf32>
    %36 = arith.addf %34, %35 : vector<16x32xf32>
    %37 = math.tanh %36 : vector<16x32xf32>
    %38 = vector.extract_strided_slice %8 {offsets = [112, 0], sizes = [16, 32], strides = [1, 1]} : vector<128x32xf32> to vector<16x32xf32>
    %cst_17 = arith.constant dense<0.000000e+00> : vector<16x32xf32>
    %39 = tpu.matmul %37, %1, %cst_17 {dimension_numbers = #tpu.dot_dimension_numbers<[1], [0], [0], [1], [0, 0, 1, 1], [], []>} : vector<16x32xf32>, vector<32x32xf32>, vector<16x32xf32> -> vector<16x32xf32>
    %40 = arith.addf %38, %39 : vector<16x32xf32>
    %41 = math.tanh %40 : vector<16x32xf32>
    %42 = tpu.concatenate %13, %17, %21, %25, %29, %33, %37, %41 in 0 : vector<16x32xf32>, vector<16x32xf32>, vector<16x32xf32>, vector<16x32xf32>, vector<16x32xf32>, vector<16x32xf32>, vector<16x32xf32>, vector<16x32xf32> -> vector<128x32xf32>
    %43 = tpu.iota {dimensions = array<i32: 1>} : vector<8x16x32xi32>
    %44 = vector.shape_cast %43 : vector<8x16x32xi32> to vector<128x32xi32>
    %cst_18 = arith.constant 0.000000e+00 : f32
    %45 = vector.broadcast %cst_18 : f32 to vector<128x64xf32>
    %c1_i32 = arith.constant 1 : i32
    %46 = tpu.dynamic_rotate %42 by %c1_i32 dim 0 : vector<128x32xf32>, i32 -> vector<128x32xf32>
    %c1_i32_19 = arith.constant 1 : i32
    %47 = vector.broadcast %c1_i32_19 : i32 to vector<128x32xi32>
    %48 = arith.cmpi sge, %44, %47 : vector<128x32xi32>
    %cst_20 = arith.constant 0.000000e+00 : f32
    %49 = vector.broadcast %cst_20 : f32 to vector<128x32xf32>
    %50 = arith.select %48, %46, %49 : vector<128x32xi1>, vector<128x32xf32>
    %c0_21 = arith.constant 0 : index
    %c0_22 = arith.constant 0 : index
    %c0_23 = arith.constant 0 : index
    %51 = vector.load %arg5[%c0_21, %c0_22, %c0_23] : memref<3x32x64xf32, #tpu.memory_space<vmem>>, vector<1x32x64xf32>
    %52 = vector.shape_cast %51 : vector<1x32x64xf32> to vector<32x64xf32>
    %cst_24 = arith.constant dense<0.000000e+00> : vector<128x64xf32>
    %53 = tpu.matmul %50, %52, %cst_24 {dimension_numbers = #tpu.dot_dimension_numbers<[1], [0], [0], [1], [0, 0, 1, 1], [], []>} : vector<128x32xf32>, vector<32x64xf32>, vector<128x64xf32> -> vector<128x64xf32>
    %54 = arith.addf %45, %53 : vector<128x64xf32>
    %c1 = arith.constant 1 : index
    %c0_25 = arith.constant 0 : index
    %c0_26 = arith.constant 0 : index
    %55 = vector.load %arg5[%c1, %c0_25, %c0_26] : memref<3x32x64xf32, #tpu.memory_space<vmem>>, vector<1x32x64xf32>
    %56 = vector.shape_cast %55 : vector<1x32x64xf32> to vector<32x64xf32>
    %cst_27 = arith.constant dense<0.000000e+00> : vector<128x64xf32>
    %57 = tpu.matmul %42, %56, %cst_27 {dimension_numbers = #tpu.dot_dimension_numbers<[1], [0], [0], [1], [0, 0, 1, 1], [], []>} : vector<128x32xf32>, vector<32x64xf32>, vector<128x64xf32> -> vector<128x64xf32>
    %58 = arith.addf %54, %57 : vector<128x64xf32>
    %c127_i32 = arith.constant 127 : i32
    %59 = tpu.dynamic_rotate %42 by %c127_i32 dim 0 : vector<128x32xf32>, i32 -> vector<128x32xf32>
    %c14_i32 = arith.constant 14 : i32
    %60 = vector.broadcast %c14_i32 : i32 to vector<128x32xi32>
    %61 = arith.cmpi sle, %44, %60 : vector<128x32xi32>
    %cst_28 = arith.constant 0.000000e+00 : f32
    %62 = vector.broadcast %cst_28 : f32 to vector<128x32xf32>
    %63 = arith.select %61, %59, %62 : vector<128x32xi1>, vector<128x32xf32>
    %c2 = arith.constant 2 : index
    %c0_29 = arith.constant 0 : index
    %c0_30 = arith.constant 0 : index
    %64 = vector.load %arg5[%c2, %c0_29, %c0_30] : memref<3x32x64xf32, #tpu.memory_space<vmem>>, vector<1x32x64xf32>
    %65 = vector.shape_cast %64 : vector<1x32x64xf32> to vector<32x64xf32>
    %cst_31 = arith.constant dense<0.000000e+00> : vector<128x64xf32>
    %66 = tpu.matmul %63, %65, %cst_31 {dimension_numbers = #tpu.dot_dimension_numbers<[1], [0], [0], [1], [0, 0, 1, 1], [], []>} : vector<128x32xf32>, vector<32x64xf32>, vector<128x64xf32> -> vector<128x64xf32>
    %67 = arith.addf %58, %66 : vector<128x64xf32>
    %68 = vector.extract_strided_slice %67 {offsets = [0, 0], sizes = [128, 32], strides = [1, 1]} : vector<128x64xf32> to vector<128x32xf32>
    %69 = vector.extract_strided_slice %67 {offsets = [0, 32], sizes = [128, 32], strides = [1, 1]} : vector<128x64xf32> to vector<128x32xf32>
    %cst_32 = arith.constant 0.000000e+00 : f32
    %70 = vector.broadcast %cst_32 : f32 to vector<128x32xf32>
    %71 = arith.subf %70, %69 : vector<128x32xf32>
    %72 = math.exp %71 : vector<128x32xf32>
    %cst_33 = arith.constant 1.000000e+00 : f32
    %73 = vector.broadcast %cst_33 : f32 to vector<128x32xf32>
    %74 = arith.addf %73, %72 : vector<128x32xf32>
    %cst_34 = arith.constant 1.000000e+00 : f32
    %75 = vector.broadcast %cst_34 : f32 to vector<128x32xf32>
    %76 = arith.divf %75, %74 : vector<128x32xf32>
    %77 = arith.mulf %68, %76 : vector<128x32xf32>
    %78 = vector.shape_cast %77 : vector<128x32xf32> to vector<8x16x32xf32>
    %c0_35 = arith.constant 0 : index
    %c0_36 = arith.constant 0 : index
    %c0_37 = arith.constant 0 : index
    %c0_38 = arith.constant 0 : index
    %79 = vector.load %arg6[%c0_35, %c0_36, %c0_37, %c0_38] : memref<1x8x16x32xf32, #tpu.memory_space<vmem>>, vector<1x8x16x32xf32>
    %80 = vector.shape_cast %79 : vector<1x8x16x32xf32> to vector<8x16x32xf32>
    %81 = vector.shape_cast %78 : vector<8x16x32xf32> to vector<1x8x16x32xf32>
    tpu.vector_store %arg6[%c0_35, %c0_36, %c0_37, %c0_38], %81 {strides = array<i32>} : memref<1x8x16x32xf32, #tpu.memory_space<vmem>>, vector<1x8x16x32xf32>,
    return
  }
  func.func @transform_0(%arg0: i32) -> (i32, i32, i32, i32) {
    %c0_i32 = arith.constant 0 : i32
    %c0_i32_0 = arith.constant 0 : i32
    %c0_i32_1 = arith.constant 0 : i32
    %c0_i32_2 = arith.constant 0 : i32
    return %arg0, %c0_i32, %c0_i32_0, %c0_i32_1 : i32, i32, i32, i32
  }
  func.func @transform_1(%arg0: i32) -> (i32, i32) {
    %c0_i32 = arith.constant 0 : i32
    %c0_i32_0 = arith.constant 0 : i32
    %c0_i32_1 = arith.constant 0 : i32
    return %c0_i32, %c0_i32_0 : i32, i32
  }
  func.func @transform_2(%arg0: i32) -> (i32, i32) {
    %c0_i32 = arith.constant 0 : i32
    %c0_i32_0 = arith.constant 0 : i32
    %c0_i32_1 = arith.constant 0 : i32
    return %c0_i32, %c0_i32_0 : i32, i32
  }
  func.func @transform_3(%arg0: i32) -> (i32, i32) {
    %c0_i32 = arith.constant 0 : i32
    %c0_i32_0 = arith.constant 0 : i32
    %c0_i32_1 = arith.constant 0 : i32
    return %c0_i32, %c0_i32_0 : i32, i32
  }
  func.func @transform_4(%arg0: i32) -> (i32, i32, i32) {
    %c0_i32 = arith.constant 0 : i32
    %c0_i32_0 = arith.constant 0 : i32
    %c0_i32_1 = arith.constant 0 : i32
    %c0_i32_2 = arith.constant 0 : i32
    return %c0_i32, %c0_i32_0, %c0_i32_1 : i32, i32, i32
  }
  func.func @transform_5(%arg0: i32) -> (i32, i32, i32, i32) {
    %c0_i32 = arith.constant 0 : i32
    %c0_i32_0 = arith.constant 0 : i32
    %c0_i32_1 = arith.constant 0 : i32
    %c0_i32_2 = arith.constant 0 : i32
    return %arg0, %c0_i32, %c0_i32_0, %c0_i32_1 : i32, i32, i32, i32
  }
}

</mosaic_0001>

<bundles_post_ra>
// kernel: tpu_custom_call.1
= control target key start
LH: loop header
LB: loop body
LE: loop exit
PB: predicated region body
PF: predicated region fallthrough
CT: control target
= control target key end

     0   :  { %10 = vsyncpa [#allocation3], 0  ;;  %s3905_s0 = inlined_call_operand.hbm [shape: f32[4,8,16,32], index: 0, kind: input, shape index: {}]   ;;  %s3906_s1 = inlined_call_operand.hbm [shape: f32[32,32], index: 1, kind: input, shape index: {}]   ;;  %s3907_s2 = inlined_call_operand.hbm [shape: f32[32,32], index: 2, kind: input, shape index: {}]   ;;  %s3908_s3 = inlined_call_operand.vmem [shape: f32[1,32], index: 3, kind: input, shape index: {}]   ;;  %s3909_s4 = inlined_call_operand.hbm [shape: f32[3,32,64], index: 4, kind: input, shape index: {}]   ;;  %s3910_s5 = inlined_call_operand.hbm [shape: f32[4,8,16,32], index: 5, kind: output, shape index: {}]  }
   0x1   :  { %12 = vsyncpa [#allocation3 + $0x1], 0 }
   0x2   :  { %13 = vsyncpa [#allocation6], 0 }
   0x3   :  { %14 = vsyncpa [#allocation9], 0 }
   0x4   :  { %15 = vsyncpa [#allocation4], 0 }
   0x5   :  { %17 = vsyncpa [#allocation4 + $0x1], 0  ;;  %s3184_s18 = smov 0   ;;  %s3186_s19 = smov 0  }
   0x6   :  { %s3188_s20 = smov 0   ;;  %s3190_s21 = smov 0  }
   0x7 LB: > { %s3205_s22 = sadd.s32 4294967295, %s3141_s21   ;;  %s2169_s23 = sadd.s32 4294967294, %s3141_s21   ;;  %s3141_s21 = sphi %s3190_s21, %s3932_s21   ;;  %s3137_s20 = sphi %s3188_s20, %s3931_s20   ;;  %s3133_s19 = sphi %s3186_s19, %s3930_s19   ;;  %s3129_s18 = sphi %s3184_s18, %s3929_s18  }
   0x8   : > { %p43_p0 = scmp.ne.s32.totalorder %s3133_s19, %s3129_s18  ;;  %p3911_p1 = scmp.eq.s32.totalorder %s3205_s22, 0 }
   0x9   : > { %p157_p3 = scmp.eq.s32.totalorder %s2169_s23, 3  ;;  %p2170_p5 = scmp.ge.s32.totalorder %s3141_s21, 1 }
   0xa   : > { %p3214_p4 = por %p3911_p1, %p43_p0  ;;  %p164_p7 = scmp.lt.s32.totalorder %s3141_s21, 5 }
   0xb   : > { %p3219_p6 = por %p157_p3, %p43_p0  ;;  %s3143_s27 = smov [#allocation5]  }
   0xc   : > { %s3914_s24 = scalar_select %p3214_p4, 1, 0 }
   0xd   : > { %s3915_s25 = scalar_select %p3219_p6, 1, 0 }
   0xe   : > { %p3224_p8 = pnand %p2170_p5, %p164_p7  ;;  %s176_s28 = sshll.u32 %s3143_s27, 4  ;;  %s3228_s28 = int_to_ptr.vmem [resolvable:$true] %s176_s28 }
   0xf   : > { %s3144_s30 = smov [#allocation7]   ;;  %s3145_s7 = smov [#allocation8]  }
  0x10   : > { %s3916_s26 = scalar_select %p3224_p8, 1, 0 }
  0x11   : > { %p2790_p9 = pneg %p3224_p8  ;;  %s189_s6 = sshll.u32 %s3144_s30, 4  ;;  %s3238_s6 = int_to_ptr.vmem [resolvable:$true] %s189_s6 }
  0x12   : > { %s3240_s8 = sshll.u32 %s3145_s7, 4  ;;  %s2953_s11 = scalar_lea.hbm %s3906_s1, 512  ;;  %s206_s8 = int_to_ptr.vmem [resolvable:$true] %s3240_s8 }
  0x13   : > { %p3234_p10 = pnand %p2790_p9, %p3911_p1  ;;  %p2954_p11 = scmp.ne.s32.totalorder %s3906_s1, %s2953_s11 }
  0x14   : > { %p2960_p3 = scmp.lt.u32.totalorder %s2953_s11, %s3906_s1 }
  0x15   : > { %p3250_p12 = pneg %p3234_p10 }
  0x17   : > { %p2956_p13 = pnand %p3250_p12, %p2954_p11 }
  0x19   : > { %p2957_p0 = pneg %p2956_p13 }
  0x1b   : > { %p2962_p5 = pnand %p2960_p3, %p2957_p0 }
  0x1d   : > { %2965 = shalt.err (!%p2962_p5)
}
  0x1e   : > { %s2966_s17 = scalar_lea.vmem %s3228_s28, 512  ;;  %p2974_p2 = scmp.lt.s32.totalorder %s3228_s28, %s3228_s28 }
  0x1f   : > { %p2967_p7 = scmp.ne.s32.totalorder %s3228_s28, %s2966_s17  ;;  %p2975_p6 = scmp.lt.s32.totalorder %s2966_s17, %s2966_s17 }
  0x21   : > { %p2969_p9 = pnand %p2967_p7, %p3250_p12  ;;  %p2976_p11 = por %p2975_p6, %p2974_p2 }
  0x23   : > { %p2970_p1 = pneg %p2969_p9 }
  0x25   : > { %p2977_p13 = pnand %p2976_p11, %p2970_p1 }
  0x27   : > { %2980 = shalt.err (!%p2977_p13)
}
  0x28   : > { %s3146_s23 = smov 128   ;;  %s3147_s27 = smov 8  }
  0x29   : > { %2793 = dma.hbm_to_vmem [thread:$0]  (!%p3234_p10), %s3906_s1, 512, %s3228_s28, [#allocation6], %s3146_s23, %s3146_s23, %s3147_s27  }
  0x2a   : > { %s2981_s11 = scalar_lea.hbm %s3907_s2, 512 }
  0x2b   : > { %p2982_p1 = scmp.ne.s32.totalorder %s3907_s2, %s2981_s11  ;;  %p2988_p0 = scmp.lt.u32.totalorder %s2981_s11, %s3907_s2 }
  0x2d   : > { %p2984_p2 = pnand %p2982_p1, %p3250_p12 }
  0x2f   : > { %p2985_p6 = pneg %p2984_p2 }
  0x31   : > { %p2990_p3 = pnand %p2988_p0, %p2985_p6 }
  0x33   : > { %2993 = shalt.err (!%p2990_p3)
}
  0x34   : > { %s2994_s28 = scalar_lea.vmem %s3238_s6, 512  ;;  %p3002_p11 = scmp.lt.s32.totalorder %s3238_s6, %s3238_s6 }
  0x35   : > { %p2995_p5 = scmp.ne.s32.totalorder %s3238_s6, %s2994_s28  ;;  %p3003_p13 = scmp.lt.s32.totalorder %s2994_s28, %s2994_s28 }
  0x37   : > { %p2997_p7 = pnand %p2995_p5, %p3250_p12  ;;  %p3004_p1 = por %p3003_p13, %p3002_p11 }
  0x39   : > { %p2998_p9 = pneg %p2997_p7 }
  0x3b   : > { %p3005_p2 = pnand %p3004_p1, %p2998_p9 }
  0x3d   : > { %3008 = shalt.err (!%p3005_p2)
}
  0x3e   : > { %2796 = dma.hbm_to_vmem [thread:$0]  (!%p3234_p10), %s3907_s2, 512, %s3238_s6, [#allocation6], %s3146_s23, %s3146_s23, %s3147_s27  }
  0x3f   : > { %s3009_s10 = scalar_lea.hbm %s3909_s4, 1536 }
  0x40   : > { %p3010_p6 = scmp.ne.s32.totalorder %s3909_s4, %s3009_s10  ;;  %p3016_p5 = scmp.lt.u32.totalorder %s3009_s10, %s3909_s4 }
  0x42   : > { %p3012_p0 = pnand %p3010_p6, %p3250_p12 }
  0x44   : > { %p3013_p3 = pneg %p3012_p0 }
  0x46   : > { %p3018_p7 = pnand %p3016_p5, %p3013_p3 }
  0x48   : > { %3021 = shalt.err (!%p3018_p7)
}
  0x49   : > { %s3022_s16 = scalar_lea.vmem %s206_s8, 1536  ;;  %p3030_p1 = scmp.lt.s32.totalorder %s206_s8, %s206_s8 }
  0x4a   : > { %p3023_p9 = scmp.ne.s32.totalorder %s206_s8, %s3022_s16  ;;  %p3031_p2 = scmp.lt.s32.totalorder %s3022_s16, %s3022_s16 }
  0x4c   : > { %p3025_p11 = pnand %p3023_p9, %p3250_p12  ;;  %p3032_p4 = por %p3031_p2, %p3030_p1 }
  0x4e   : > { %p3026_p13 = pneg %p3025_p11 }
  0x50   : > { %p3033_p8 = pnand %p3032_p4, %p3026_p13 }
  0x52   : > { %3036 = shalt.err (!%p3033_p8)
}
  0x53   : > { %2799 = dma.hbm_to_vmem [thread:$0]  (!%p3234_p10), %s3909_s4, 1536, %s206_s8, [#allocation9], %s3146_s23, %s3146_s23, %s3147_s27  }
  0x54   : > { %s3323_s14 = sadd.s32 1, %s3141_s21   ;;  %s30_s17 = sadd.s32 1, %s3137_s20 }
  0x55   : > { %s27_s29 = ssub.s32 %s3141_s21, %s3323_s14  ;;  %p37_p8 = scmp.ne.s32.totalorder %s3137_s20, %s3133_s19 }
  0x56   : > { %p28_p4 = scmp.eq.s32.totalorder %s27_s29, 0  ;;  %p38_p12 = scmp.eq.s32.totalorder %s3141_s21, 0 }
  0x57   : > { %p2811_p6 = scmp.lt.s32.totalorder %s3141_s21, 4  ;;  %p3919_p3 = scmp.eq.s32.totalorder %s3205_s22, 3 }
  0x58   : > { %s3333_s30 = scalar_select %p28_p4, %s3137_s20, %s30_s17  }
  0x59   : > { %p39_p0 = por %p38_p12, %p37_p8  ;;  %p3337_p5 = por %p3919_p3, %p37_p8 }
  0x5a   : > { %s219_s9 = sand.u32 1, %s3137_s20   ;;  %s2268_s10 = sshll.u32 %s3141_s21, 11 }
  0x5b   : > { %s2175_s8 = sshll.u32 %s219_s9, 7  ;;  %s3346_s13 = scalar_lea.hbm %s3905_s0, %s2268_s10 }
  0x5c   : > { %s223_s15 = scalar_lea.vmem [#allocation2], %s2175_s8  ;;  %p3348_p10 = pnand %p2811_p6, %p39_p0 }
  0x5d   : > { %s230_s16 = sshll.u32 %s223_s15, 4  ;;  %s3354_s28 = scalar_lea.sflag [#allocation3], %s219_s9  ;;  %s3352_s16 = int_to_ptr.vmem [resolvable:$true] %s230_s16 }
  0x5e   : > { %s3037_s29 = scalar_lea.hbm %s3346_s13, 2048  ;;  %p3039_p9 = pneg %p3348_p10 }
  0x5f   : > { %p3038_p7 = scmp.ne.s32.totalorder %s3346_s13, %s3037_s29  ;;  %s3042_s8 = scalar_lea.hbm %s3905_s0, 8192 }
  0x60   : > { %p3043_p1 = scmp.lt.u32.totalorder %s3346_s13, %s3905_s0  ;;  %p3044_p2 = scmp.lt.u32.totalorder %s3042_s8, %s3037_s29 }
  0x61   : > { %p3040_p11 = pnand %p3039_p9, %p3038_p7  ;;  %p3046_p8 = scmp.lt.u32.totalorder %s3037_s29, %s3346_s13 }
  0x62   : > { %p3045_p4 = por %p3044_p2, %p3043_p1 }
  0x63   : > { %p3041_p13 = pneg %p3040_p11 }
  0x64   : > { %p3047_p12 = por %p3046_p8, %p3045_p4 }
  0x66   : > { %p3048_p6 = pnand %p3047_p12, %p3041_p13 }
  0x68   : > { %3051 = shalt.err (!%p3048_p6)
}
  0x69   : > { %s3052_s9 = scalar_lea.vmem %s3352_s16, 2048  ;;  %s3148_s15 = smov [#allocation2]  }
  0x6a   : > { %p3053_p0 = scmp.ne.s32.totalorder %s3352_s16, %s3052_s9  ;;  %s3057_s17 = sshll.u32 %s3148_s15, 4  ;;  %s3058_s17 = int_to_ptr.vmem [resolvable:$false] %s3057_s17 }
  0x6b   : > { %s3059_s10 = scalar_lea.vmem %s3058_s17, 4096  ;;  %p3060_p11 = scmp.lt.s32.totalorder %s3352_s16, %s3058_s17 }
  0x6c   : > { %p3055_p3 = pnand %p3053_p0, %p3039_p9  ;;  %p3061_p1 = scmp.lt.s32.totalorder %s3059_s10, %s3052_s9 }
  0x6e   : > { %p3056_p7 = pneg %p3055_p3  ;;  %p3062_p2 = por %p3061_p1, %p3060_p11 }
  0x70   : > { %p3063_p4 = pnand %p3062_p2, %p3056_p7 }
  0x72   : > { %3066 = shalt.err (!%p3063_p4)
}
  0x73   : > { %2803 = dma.hbm_to_vmem [thread:$0]  (!%p3348_p10), %s3346_s13, 2048, %s3352_s16, %s3354_s28, %s3146_s23, %s3146_s23, %s3147_s27  }
  0x74   : > { %p3922_p9 = scmp.ne.s32.totalorder %s3916_s26, 0 }
  0x75   : > { %s3388_s29 = sand.u32 (!%p3922_p9), 1, %s3133_s19   ;;  %p3923_p13 = scmp.ne.s32.totalorder (!%p3922_p9), %s3914_s24, 0 }
  0x76   : > { %242 = sbr.rel (%p3922_p9) target bundleno = 2432 (0x980), region = 40  ;;  %s2179_s8 = sshll.u32 (!%p3922_p9), %s3388_s29, 7 }
  0x77   : > { %s245_s11 = scalar_lea.sflag (!%p3922_p9), [#allocation3], %s3388_s29  ;;  %s3394_s6 = scalar_lea.vmem (!%p3922_p9), [#allocation2], %s2179_s8 }
  0x7d   : > { %3112 = dma.done.wait (%p3923_p13), %s245_s11, 2048  }
  0x7e   : > { %3114 = vsyncadd (%p3923_p13), %s245_s11, 4294965248  ;;  %p3924_p10 = scmp.eq.s32.totalorder %s3205_s22, 0 }
  0x80   : > { %3116 = dma.done.wait (%p3924_p10), [#allocation6], 1024   ;;  %p3925_p8 = pmov %p3924_p10 }
  0x82   : > { %3118 = vsyncadd (%p3925_p8), [#allocation6], 4294966272  ;;  %p3926_p12 = pmov %p3925_p8 }
  0x83   : > { %p3927_p6 = pmov %p3925_p8 }
  0x84   : > { %3120 = dma.done.wait (%p3926_p12), [#allocation9], 1536  }
  0x85   : > { %3122 = vsyncadd (%p3927_p6), [#allocation9], 4294965760  ;;  %vm318_vm0 = vcmask 261120   ;;  %v287_v0 = vld [vmem:[#allocation5] sm:$0xff]  ;;  %v288_v1 = vld [vmem:[#allocation5 + $0x8] sm:$0xff]  ;;  %v3149_v28 = vmov 0.0   ;;  %v1189_v40 = vlaneseq }
  0x86   : > { %v289_v2 = vld [vmem:[#allocation5 + $0x10] sm:$0xff]  ;;  %v2614_v3 = vpack.c.bf16 %v288_v1, %v287_v0  ;;  %v290_v4 = vld [vmem:[#allocation5 + $0x18] sm:$0xff]  ;;  %v295_v5 = vld [vmem:[%s3394_s6] sm:$0xff]  ;;  %s3150_s23 = smov 96   ;;  %s3806_s27 = scalar_lea.vmem [#allocation10], %s2179_s8 }
  0x87   : > { %v2618_v6 = vpack.c.bf16 %v290_v4, %v289_v2  ;;  %2406 = vmatprep.mubr.msk.f32.mxu0 %vm318_vm0, %v295_v5  ;;  %v291_v7 = vld [vmem:[#allocation7] sm:$0xff]  ;;  %v292_v8 = vld [vmem:[#allocation7 + $0x8] sm:$0xff]  ;;  %v293_v10 = vld [vmem:[#allocation7 + $0x10] sm:$0xff]  ;;  %v3460_v41 = vshrl.u32 %v1189_v40, 7  ;;  %s2269_s13 = sshll.u32 %s3205_s22, 11  ;;  %s2067_s16 = sshll.u32 %s3806_s27, 4  ;;  %s3857_s16 = int_to_ptr.vmem [resolvable:$true] %s2067_s16 }
  0x88   : > { %2615 = vmatprep.subr.bf16.mxu0 %v2614_v3  ;;  %v3410_v9 = vpack.c.bf16 %v292_v8, %v291_v7  ;;  %v294_v11 = vld [vmem:[#allocation7 + $0x18] sm:$0xff]  ;;  %v296_v12 = vld [vmem:[%s3394_s6 + $0x8] sm:$0xff]  ;;  %v297_v13 = vld [vmem:[%s3394_s6 + $0x10] sm:$0xff]  ;;  %s3855_s9 = scalar_lea.hbm %s3910_s5, %s2269_s13  ;;  %s2054_s22 = scalar_lea.sflag [#allocation4], %s3388_s29 }
  0x89   : > { %2617 = vmatpush3.bf16.msra.mxu0 %v2614_v3  ;;  %v3415_v14 = vpack.c.bf16 %v294_v11, %v293_v10  ;;  %v298_v15 = vld [vmem:[%s3394_s6 + $0x18] sm:$0xff]  ;;  %v299_v16 = vld [vmem:[%s3394_s6 + $0x20] sm:$0xff]  ;;  %v300_v17 = vld [vmem:[%s3394_s6 + $0x28] sm:$0xff]  ;;  %vm1208_vm1 = vcmp.lt.s32.totalorder %v3460_v41, 1  ;;  %vm1612_vm2 = vcmp.lt.s32.totalorder %v3460_v41, 7  ;;  %vm1225_vm3 = vcmp.ge.s32.totalorder %v3460_v41, 1 }
  0x8a   : > { %2619 = vmatprep.subr.bf16.mxu0 %v2618_v6  ;;  %v301_v18 = vld [vmem:[%s3394_s6 + $0x30] sm:$0xff]  ;;  %v302_v19 = vld [vmem:[%s3394_s6 + $0x38] sm:$0xff]  ;;  %v303_v20 = vld [vmem:[%s3394_s6 + $0x40] sm:$0xff]  ;;  %s3067_s15 = scalar_lea.vmem %s3857_s16, 2048  ;;  %s3151_s17 = smov [#allocation10]  }
  0x8b   : > { %v304_v21 = vld [vmem:[%s3394_s6 + $0x48] sm:$0xff]  ;;  %v305_v22 = vld [vmem:[%s3394_s6 + $0x50] sm:$0xff]  ;;  %v306_v23 = vld [vmem:[%s3394_s6 + $0x58] sm:$0xff]  ;;  %p3068_p0 = scmp.ne.s32.totalorder %s3857_s16, %s3067_s15  ;;  %s3071_s10 = sshll.u32 %s3151_s17, 4  ;;  %s3072_s10 = int_to_ptr.vmem [resolvable:$false] %s3071_s10 }
  0x8c   : > { %v307_v24 = vld [vmem:[%s3394_s6 + $0x60] sm:$0xff]  ;;  %v308_v25 = vld [vmem:[%s3394_s6 + $0x68] sm:$0xff]  ;;  %v309_v26 = vld [vmem:[%s3394_s6 + $0x70] sm:$0xff]  ;;  %s3073_s8 = scalar_lea.vmem %s3072_s10, 4096  ;;  %p3074_p11 = scmp.lt.s32.totalorder %s3857_s16, %s3072_s10 }
  0x8d   : > { %2621 = vmatpush3.bf16.msra.mxu0 %v2618_v6  ;;  %v310_v27 = vld [vmem:[%s3394_s6 + $0x78] sm:$0xff]  ;;  %v1248_v29 = vld [vmem:[#allocation8 + $0x20] sm:$0xff]  ;;  %v1249_v30 = vld [vmem:[#allocation8 + $0x28] sm:$0xff]  ;;  %p3069_p3 = pnand %p3068_p0, %p3337_p5  ;;  %p3075_p1 = scmp.lt.s32.totalorder %s3073_s8, %s3067_s15 }
  0x8e   : > { %2623 = vmatprep.subr.bf16.mxu0 %v3410_v9  ;;  %v1250_v31 = vld [vmem:[#allocation8 + $0x30] sm:$0xff]  ;;  %v2686_v32 = vpack.c.bf16 %v1249_v30, %v1248_v29  ;;  %v1251_v33 = vld [vmem:[#allocation8 + $0x38] sm:$0xff]  ;;  %v3456_v35 = vld [vmem:[%s3908_s3] ss:$0 sm:$0xff] }
  0x8f   : > { %v2690_v34 = vpack.c.bf16 %v1251_v33, %v1250_v31  ;;  %p3070_p7 = pneg %p3069_p3  ;;  %p3076_p2 = por %p3075_p1, %p3074_p11 }
  0x90   : > { %2407 = vmatmul.mubr.msk.f32.vlgmr.msra.gmra.mrb[0].mxu0 %vm318_vm0, %v296_v12  ;;  %2687 = vmatprep.subr.bf16.mxu1 %v2686_v32 }
  0x91   : > { %2625 = vmatpush3.bf16.msra.mxu0 %v3410_v9  ;;  %2409 = vmatprep.mubr.msk.f32.mxu0 %vm318_vm0, %v297_v13  ;;  %p3077_p4 = pnand %p3076_p2, %p3070_p7 }
  0x92   : > { %2627 = vmatprep.subr.bf16.mxu0 %v3415_v14  ;;  %2689 = vmatpush3.bf16.msra.mxu1 %v2686_v32 }
  0x93   : > { %2691 = vmatprep.subr.bf16.mxu1 %v2690_v34 }
  0x94   : > { %2410 = vmatmul.mubr.msk.f32.gmra.mrb[2].mxu0 %vm318_vm0, %v298_v15 }
  0x95   : > { %2412 = vmatprep.mubr.msk.f32.mxu0 %vm318_vm0, %v299_v16  ;;  %2629 = vmatpush3.bf16.msra.mxu0 %v3415_v14 }
  0x96   : > { %2631 = vmatprep.subr.bf16.mxu0 %v3410_v9  ;;  %2693 = vmatpush3.bf16.msra.mxu1 %v2690_v34 }
  0x98   : > { %2413 = vmatmul.mubr.msk.f32.gmra.mrb[4].mxu0 %vm318_vm0, %v300_v17 }
  0x99   : > { %2415 = vmatprep.mubr.msk.f32.mxu0 %vm318_vm0, %v301_v18 }
  0x9c   : > { %2416 = vmatmul.mubr.msk.f32.gmra.mrb[6].mxu0 %vm318_vm0, %v302_v19 }
  0x9d   : > { %2418 = vmatprep.mubr.msk.f32.mxu0 %vm318_vm0, %v303_v20 }
  0xa0   : > { %2419 = vmatmul.mubr.msk.f32.gmra.mrb[8].mxu0 %vm318_vm0, %v304_v21 }
  0xa1   : > { %2421 = vmatprep.mubr.msk.f32.mxu0 %vm318_vm0, %v305_v22 }
  0xa4   : > { %2422 = vmatmul.mubr.msk.f32.gmra.mrb[10].mxu0 %vm318_vm0, %v306_v23 }
  0xa5   : > { %2424 = vmatprep.mubr.msk.f32.mxu0 %vm318_vm0, %v307_v24 }
  0xa8   : > { %2425 = vmatmul.mubr.msk.f32.gmra.mrb[12].mxu0 %vm318_vm0, %v308_v25 }
  0xa9   : > { %2427 = vmatprep.mubr.msk.f32.mxu0 %vm318_vm0, %v309_v26 }
  0xac   : > { %2428 = vmatmul.mubr.msk.f32.gmra.mrb[14].mxu0 %vm318_vm0, %v310_v27 }
  0xad   : > { %2438 = vmatprep.mubr.f32.mxu0 %v3149_v28 }
  0xb0   : > { %2439 = vmatmul.mubr.f32.vlgmr.msra.gmra.mrb[0].mxu0 %v3149_v28 }
  0xb1   : > { %2633 = vmatpush3.bf16.msra.mxu0 %v3410_v9 }
  0xb2   : > { %2635 = vmatprep.subr.bf16.mxu0 %v3415_v14 }
  0xb5   : > { %2637 = vmatpush3.bf16.msra.mxu0 %v3415_v14 }
  0xb6   : > { %2639 = vmatprep.subr.bf16.mxu0 %v3410_v9 }
 0x183   : > { %v2440_v36 = vpop.f32.mrb[0].mxu0 }
 0x184   : > { %v2710_v37 = vadd.f32 %v2440_v36, %v3456_v35  ;;  %v581_v38 = vpop.f32.mrb[1].mxu0 }
 0x185   : > { %v2711_v39 = vadd.f32 %v3456_v35, %v581_v38 }
 0x186   : > { %2857 = vtanh.f32 %v2710_v37 }
 0x187   : > { %2859 = vtanh.f32 %v2711_v39 }
 0x190   : > { %v2858_v42 = vpop.eup %2857 }
 0x191   : > { %v3462_v43 = vpop.eup %2859  ;;  %v1193_v44 = vrot.slane %v2858_v42, 7  ;;  %v1597_v45 = vrot.slane %v2858_v42, 1 }
 0x192   : > { %2449 = vmatprep.mubr.msk.f32.mxu0 %vm318_vm0, %v3462_v43  ;;  %2526 = vmatprep.mubr.msk.f32.mxu1 %vm318_vm0, %v3462_v43  ;;  %v1192_v46 = vrot.slane %v3462_v43, 7  ;;  %v1596_v47 = vrot.slane %v3462_v43, 1 }
 0x193   : > { %2450 = vmatmul.mubr.msk.f32.vlgmr.msra.gmra.mrb[2].mxu0 %vm318_vm0, %v2858_v42  ;;  %2527 = vmatmul.mubr.msk.f32.vlgmr.msra.gmra.mrb[0].mxu1 %vm318_vm0, %v2858_v42 }
 0x194   : > { %2641 = vmatpush3.bf16.msra.mxu0 %v3410_v9  ;;  %v3479_v48 = vsel %vm1208_vm1, %v1192_v46, %v1193_v44  ;;  %v3485_v49 = vsel %vm1612_vm2, %v1596_v47, %v1597_v45 }
 0x195   : > { %2643 = vmatprep.subr.bf16.mxu0 %v3415_v14 }
 0x198   : > { %2645 = vmatpush3.bf16.msra.mxu0 %v3415_v14 }
 0x199   : > { %2647 = vmatprep.subr.bf16.mxu0 %v3410_v9 }
 0x266   : > { %v2451_v50 = vpop.f32.mrb[2].mxu0 }
 0x267   : > { %v2712_v51 = vadd.f32 %v2451_v50, %v3456_v35  ;;  %v666_v52 = vpop.f32.mrb[3].mxu0 }
 0x268   : > { %v2713_v53 = vadd.f32 %v3456_v35, %v666_v52 }
 0x269   : > { %2861 = vtanh.f32 %v2712_v51 }
 0x26a   : > { %2863 = vtanh.f32 %v2713_v53 }
 0x273   : > { %v2862_v54 = vpop.eup %2861 }
 0x274   : > { %v2864_v55 = vpop.eup %2863  ;;  %v1195_v56 = vrot.slane %v2862_v54, 7  ;;  %v1599_v57 = vrot.slane %v2862_v54, 1 }
 0x275   : > { %2460 = vmatprep.mubr.msk.f32.mxu0 %vm318_vm0, %v2864_v55  ;;  %2529 = vmatprep.mubr.msk.f32.mxu1 %vm318_vm0, %v2864_v55  ;;  %v1194_v58 = vrot.slane %v2864_v55, 7  ;;  %v1598_v59 = vrot.slane %v2864_v55, 1 }
 0x276   : > { %2461 = vmatmul.mubr.msk.f32.vlgmr.msra.gmra.mrb[4].mxu0 %vm318_vm0, %v2862_v54  ;;  %2530 = vmatmul.mubr.msk.f32.gmra.mrb[2].mxu1 %vm318_vm0, %v2862_v54 }
 0x277   : > { %2649 = vmatpush3.bf16.msra.mxu0 %v3410_v9  ;;  %v3499_v60 = vsel %vm1208_vm1, %v1193_v44, %v1194_v58  ;;  %v3503_v61 = vsel %vm1208_vm1, %v1194_v58, %v1195_v56  ;;  %v3507_v62 = vsel %vm1612_vm2, %v1597_v45, %v1598_v59  ;;  %v3511_v63 = vsel %vm1612_vm2, %v1598_v59, %v1599_v57 }
 0x278   : > { %2651 = vmatprep.subr.bf16.mxu0 %v3415_v14 }
 0x27b   : > { %2653 = vmatpush3.bf16.msra.mxu0 %v3415_v14 }
 0x27c   : > { %2655 = vmatprep.subr.bf16.mxu0 %v3410_v9 }
 0x349   : > { %v2462_v0 = vpop.f32.mrb[4].mxu0 }
 0x34a   : > { %v2714_v1 = vadd.f32 %v2462_v0, %v3456_v35  ;;  %v751_v2 = vpop.f32.mrb[5].mxu0 }
 0x34b   : > { %v2715_v3 = vadd.f32 %v3456_v35, %v751_v2 }
 0x34c   : > { %2865 = vtanh.f32 %v2714_v1 }
 0x34d   : > { %2867 = vtanh.f32 %v2715_v3 }
 0x356   : > { %v2866_v4 = vpop.eup %2865 }
 0x357   : > { %v2868_v5 = vpop.eup %2867  ;;  %v1197_v6 = vrot.slane %v2866_v4, 7  ;;  %v1601_v7 = vrot.slane %v2866_v4, 1 }
 0x358   : > { %2471 = vmatprep.mubr.msk.f32.mxu0 %vm318_vm0, %v2868_v5  ;;  %2532 = vmatprep.mubr.msk.f32.mxu1 %vm318_vm0, %v2868_v5  ;;  %v1196_v8 = vrot.slane %v2868_v5, 7  ;;  %v1600_v10 = vrot.slane %v2868_v5, 1  ;;  %v1244_v5 = vld [vmem:[#allocation8 + $0x8] sm:$0xff] }
 0x359   : > { %2472 = vmatmul.mubr.msk.f32.vlgmr.msra.gmra.mrb[6].mxu0 %vm318_vm0, %v2866_v4  ;;  %2533 = vmatmul.mubr.msk.f32.gmra.mrb[4].mxu1 %vm318_vm0, %v2866_v4 }
 0x35a   : > { %2657 = vmatpush3.bf16.msra.mxu0 %v3410_v9  ;;  %v3525_v11 = vsel %vm1208_vm1, %v1195_v56, %v1196_v8  ;;  %v3529_v12 = vsel %vm1208_vm1, %v1196_v8, %v1197_v6  ;;  %v3533_v13 = vsel %vm1612_vm2, %v1599_v57, %v1600_v10  ;;  %v3537_v15 = vsel %vm1612_vm2, %v1600_v10, %v1601_v7 }
 0x35b   : > { %2659 = vmatprep.subr.bf16.mxu0 %v3415_v14 }
 0x35e   : > { %2661 = vmatpush3.bf16.msra.mxu0 %v3415_v14 }
 0x35f   : > { %2663 = vmatprep.subr.bf16.mxu0 %v3410_v9 }
 0x42c   : > { %v2473_v16 = vpop.f32.mrb[6].mxu0 }
 0x42d   : > { %v2716_v17 = vadd.f32 %v2473_v16, %v3456_v35  ;;  %v836_v18 = vpop.f32.mrb[7].mxu0 }
 0x42e   : > { %v2717_v19 = vadd.f32 %v3456_v35, %v836_v18 }
 0x42f   : > { %2869 = vtanh.f32 %v2716_v17 }
 0x430   : > { %2871 = vtanh.f32 %v2717_v19 }
 0x439   : > { %v2870_v20 = vpop.eup %2869 }
 0x43a   : > { %v2872_v21 = vpop.eup %2871  ;;  %v1199_v22 = vrot.slane %v2870_v20, 7  ;;  %v1603_v23 = vrot.slane %v2870_v20, 1 }
 0x43b   : > { %2482 = vmatprep.mubr.msk.f32.mxu0 %vm318_vm0, %v2872_v21  ;;  %2535 = vmatprep.mubr.msk.f32.mxu1 %vm318_vm0, %v2872_v21  ;;  %v1198_v24 = vrot.slane %v2872_v21, 7  ;;  %v1602_v25 = vrot.slane %v2872_v21, 1 }
 0x43c   : > { %2483 = vmatmul.mubr.msk.f32.vlgmr.msra.gmra.mrb[8].mxu0 %vm318_vm0, %v2870_v20  ;;  %2536 = vmatmul.mubr.msk.f32.gmra.mrb[6].mxu1 %vm318_vm0, %v2870_v20 }
 0x43d   : > { %2665 = vmatpush3.bf16.msra.mxu0 %v3410_v9  ;;  %v3551_v26 = vsel %vm1208_vm1, %v1197_v6, %v1198_v24  ;;  %v3555_v27 = vsel %vm1208_vm1, %v1198_v24, %v1199_v22  ;;  %v3559_v28 = vsel %vm1612_vm2, %v1601_v7, %v1602_v25  ;;  %v3563_v29 = vsel %vm1612_vm2, %v1602_v25, %v1603_v23 }
 0x43e   : > { %2667 = vmatprep.subr.bf16.mxu0 %v3415_v14 }
 0x441   : > { %2669 = vmatpush3.bf16.msra.mxu0 %v3415_v14 }
 0x442   : > { %2671 = vmatprep.subr.bf16.mxu0 %v3410_v9 }
 0x50f   : > { %v2484_v30 = vpop.f32.mrb[8].mxu0 }
 0x510   : > { %v2718_v31 = vadd.f32 %v2484_v30, %v3456_v35  ;;  %v921_v32 = vpop.f32.mrb[9].mxu0  ;;  %v1245_v30 = vld [vmem:[#allocation8 + $0x10] sm:$0xff] }
 0x511   : > { %v2719_v33 = vadd.f32 %v3456_v35, %v921_v32 }
 0x512   : > { %2873 = vtanh.f32 %v2718_v31  ;;  %v1246_v31 = vld [vmem:[#allocation8 + $0x18] sm:$0xff] }
 0x513   : > { %2875 = vtanh.f32 %v2719_v33  ;;  %v2698_v32 = vpack.c.bf16 %v1246_v31, %v1245_v30  ;;  %v1648_v33 = vld [vmem:[#allocation8 + $0x40] sm:$0xff] }
 0x51c   : > { %v2874_v34 = vpop.eup %2873 }
 0x51d   : > { %v2876_v36 = vpop.eup %2875  ;;  %v1201_v37 = vrot.slane %v2874_v34, 7  ;;  %v1605_v38 = vrot.slane %v2874_v34, 1 }
 0x51e   : > { %2493 = vmatprep.mubr.msk.f32.mxu0 %vm318_vm0, %v2876_v36  ;;  %2538 = vmatprep.mubr.msk.f32.mxu1 %vm318_vm0, %v2876_v36  ;;  %v1200_v39 = vrot.slane %v2876_v36, 7  ;;  %v1604_v40 = vrot.slane %v2876_v36, 1 }
 0x51f   : > { %2494 = vmatmul.mubr.msk.f32.vlgmr.msra.gmra.mrb[10].mxu0 %vm318_vm0, %v2874_v34  ;;  %2539 = vmatmul.mubr.msk.f32.gmra.mrb[8].mxu1 %vm318_vm0, %v2874_v34  ;;  %v1649_v34 = vld [vmem:[#allocation8 + $0x48] sm:$0xff] }
 0x520   : > { %2673 = vmatpush3.bf16.msra.mxu0 %v3410_v9  ;;  %v3577_v42 = vsel %vm1208_vm1, %v1199_v22, %v1200_v39  ;;  %v3581_v44 = vsel %vm1208_vm1, %v1200_v39, %v1201_v37  ;;  %v3585_v45 = vsel %vm1612_vm2, %v1603_v23, %v1604_v40  ;;  %v3589_v50 = vsel %vm1612_vm2, %v1604_v40, %v1605_v38 }
 0x521   : > { %2675 = vmatprep.subr.bf16.mxu0 %v3415_v14  ;;  %v2702_v36 = vpack.c.bf16 %v1649_v34, %v1648_v33 }
 0x524   : > { %2677 = vmatpush3.bf16.msra.mxu0 %v3415_v14 }
 0x525   : > { %2679 = vmatprep.subr.bf16.mxu0 %v3410_v9 }
 0x5f2   : > { %v2495_v51 = vpop.f32.mrb[10].mxu0 }
 0x5f3   : > { %v2720_v52 = vadd.f32 %v2495_v51, %v3456_v35  ;;  %v1006_v53 = vpop.f32.mrb[11].mxu0 }
 0x5f4   : > { %v2721_v54 = vadd.f32 %v3456_v35, %v1006_v53 }
 0x5f5   : > { %2877 = vtanh.f32 %v2720_v52 }
 0x5f6   : > { %2879 = vtanh.f32 %v2721_v54 }
 0x5ff   : > { %v2878_v55 = vpop.eup %2877 }
 0x600   : > { %v2880_v56 = vpop.eup %2879  ;;  %v1203_v57 = vrot.slane %v2878_v55, 7  ;;  %v1607_v58 = vrot.slane %v2878_v55, 1 }
 0x601   : > { %2504 = vmatprep.mubr.msk.f32.mxu0 %vm318_vm0, %v2880_v56  ;;  %2541 = vmatprep.mubr.msk.f32.mxu1 %vm318_vm0, %v2880_v56  ;;  %v1202_v59 = vrot.slane %v2880_v56, 7  ;;  %v1606_v0 = vrot.slane %v2880_v56, 1  ;;  %v1651_v56 = vld [vmem:[#allocation8 + $0x58] sm:$0xff] }
 0x602   : > { %2505 = vmatmul.mubr.msk.f32.vlgmr.msra.gmra.mrb[12].mxu0 %vm318_vm0, %v2878_v55  ;;  %2542 = vmatmul.mubr.msk.f32.gmra.mrb[10].mxu1 %vm318_vm0, %v2878_v55  ;;  %v1650_v55 = vld [vmem:[#allocation8 + $0x50] sm:$0xff] }
 0x603   : > { %2681 = vmatpush3.bf16.msra.mxu0 %v3410_v9  ;;  %v3603_v1 = vsel %vm1208_vm1, %v1201_v37, %v1202_v59  ;;  %v3607_v2 = vsel %vm1208_vm1, %v1202_v59, %v1203_v57  ;;  %v3611_v3 = vsel %vm1612_vm2, %v1605_v38, %v1606_v0  ;;  %v3615_v4 = vsel %vm1612_vm2, %v1606_v0, %v1607_v58  ;;  %v1243_v9 = vld [vmem:[#allocation8] sm:$0xff] }
 0x604   : > { %2683 = vmatprep.subr.bf16.mxu0 %v3415_v14  ;;  %v2694_v6 = vpack.c.bf16 %v1244_v5, %v1243_v9 }
 0x606   : > { %2695 = vmatprep.subr.bf16.mxu1 %v2694_v6 }
 0x607   : > { %2685 = vmatpush3.bf16.msra.mxu0 %v3415_v14  ;;  %2697 = vmatpush3.bf16.msra.mxu1 %v2694_v6 }
 0x608   : > { %2699 = vmatprep.subr.bf16.mxu1 %v2698_v32 }
 0x60b   : > { %2701 = vmatpush3.bf16.msra.mxu1 %v2698_v32 }
 0x60c   : > { %2703 = vmatprep.subr.bf16.mxu1 %v2702_v36 }
 0x6d5   : > { %v2506_v7 = vpop.f32.mrb[12].mxu0 }
 0x6d6   : > { %v2722_v8 = vadd.f32 %v2506_v7, %v3456_v35  ;;  %v1091_v10 = vpop.f32.mrb[13].mxu0  ;;  %v1231_v7 = vsel %vm1225_vm3, %v3525_v11, 0.0 }
 0x6d7   : > { %v2723_v16 = vadd.f32 %v3456_v35, %v1091_v10 }
 0x6d8   : > { %2881 = vtanh.f32 %v2722_v8 }
 0x6d9   : > { %2883 = vtanh.f32 %v2723_v16 }
 0x6e2   : > { %v2882_v17 = vpop.eup %2881 }
 0x6e3   : > { %v2884_v18 = vpop.eup %2883  ;;  %v1205_v19 = vrot.slane %v2882_v17, 7  ;;  %v1609_v20 = vrot.slane %v2882_v17, 1 }
 0x6e4   : > { %2515 = vmatprep.mubr.msk.f32.mxu0 %vm318_vm0, %v2884_v18  ;;  %2544 = vmatprep.mubr.msk.f32.mxu1 %vm318_vm0, %v2884_v18  ;;  %v1204_v14 = vrot.slane %v2884_v18, 7  ;;  %v1608_v21 = vrot.slane %v2884_v18, 1 }
 0x6e5   : > { %2516 = vmatmul.mubr.msk.f32.vlgmr.msra.gmra.mrb[14].mxu0 %vm318_vm0, %v2882_v17  ;;  %2545 = vmatmul.mubr.msk.f32.gmra.mrb[12].mxu1 %vm318_vm0, %v2882_v17 }
 0x6e6   : > { %v1212_v22 = vsel %vm1208_vm1, %v1203_v57, %v1204_v14  ;;  %v1211_v23 = vsel %vm1208_vm1, %v1204_v14, %v1205_v19  ;;  %v3631_v24 = vsel %vm1612_vm2, %v1607_v58, %v1608_v21  ;;  %v3635_v25 = vsel %vm1612_vm2, %v1608_v21, %v1609_v20 }
 0x6e7   : > { %v1239_v11 = vsel %vm1225_vm3, %v1212_v22, 0.0 }
 0x7b8   : > { %v2517_v37 = vpop.f32.mrb[14].mxu0 }
 0x7b9   : > { %v2724_v38 = vadd.f32 %v2517_v37, %v3456_v35  ;;  %v1176_v39 = vpop.f32.mrb[15].mxu0 }
 0x7ba   : > { %v2725_v40 = vadd.f32 %v3456_v35, %v1176_v39 }
 0x7bb   : > { %2885 = vtanh.f32 %v2724_v38 }
 0x7bc   : > { %2887 = vtanh.f32 %v2725_v40 }
 0x7c5   : > { %v2886_v51 = vpop.eup %2885 }
 0x7c6   : > { %v2888_v52 = vpop.eup %2887  ;;  %v1207_v53 = vrot.slane %v2886_v51, 7  ;;  %v1611_v54 = vrot.slane %v2886_v51, 1 }
 0x7c7   : > { %2547 = vmatprep.mubr.msk.f32.mxu1 %vm318_vm0, %v2888_v52  ;;  %v1206_v57 = vrot.slane %v2888_v52, 7  ;;  %v1610_v58 = vrot.slane %v2888_v52, 1 }
 0x7c8   : > { %2548 = vmatmul.mubr.msk.f32.gmra.mrb[14].mxu1 %vm318_vm0, %v2886_v51  ;;  %v1224_v59 = vsel %vm1208_vm1, %v1207_v53, %v1192_v46  ;;  %v1628_v35 = vsel %vm1612_vm2, %v1611_v54, %v1596_v47  ;;  %v2706_v46 = vpack.c.bf16 %v1651_v56, %v1650_v55  ;;  %v1229_v47 = vsel %vm1225_vm3, %v3499_v60, 0.0 }
 0x7c9   : > { %v1227_v0 = vsel %vm1225_vm3, %v1224_v59, 0.0  ;;  %v1210_v9 = vsel %vm1208_vm1, %v1205_v19, %v1206_v57  ;;  %v1209_v5 = vsel %vm1208_vm1, %v1206_v57, %v1207_v53  ;;  %v1614_v6 = vsel %vm1612_vm2, %v1609_v20, %v1610_v58 }
 0x7ca   : > { %2558 = vmatprep.mubr.msk.f32.mxu1 %vm318_vm0, %v1227_v0  ;;  %v1613_v43 = vsel %vm1612_vm2, %v1610_v58, %v1611_v54  ;;  %v1235_v60 = vsel %vm1225_vm3, %v3577_v42, 0.0 }
 0x7cc   : > { %2559 = vmatmul.mubr.msk.f32.vlgmr.msra.gmra.mrb[0].mxu1 %vm318_vm0, %v3479_v48  ;;  %v1233_v48 = vsel %vm1225_vm3, %v3551_v26, 0.0  ;;  %v1191_v26 = vadd.s32 8, %v3460_v41 }
 0x7cd   : > { %2561 = vmatprep.mubr.msk.f32.mxu1 %vm318_vm0, %v1229_v47  ;;  %2705 = vmatpush3.bf16.msra.mxu1 %v2702_v36 }
 0x7ce   : > { %2707 = vmatprep.subr.bf16.mxu1 %v2706_v46  ;;  %vm1630_vm4 = vcmp.le.s32.totalorder %v1191_v26, 14 }
 0x7cf   : > { %v1634_v42 = vsel %vm1630_vm4, %v3533_v13, 0.0  ;;  %v1636_v41 = vsel %vm1630_vm4, %v3559_v28, 0.0  ;;  %v1644_v13 = vsel %vm1630_vm4, %v1614_v6, 0.0 }
 0x7d0   : > { %2562 = vmatmul.mubr.msk.f32.gmra.mrb[2].mxu1 %vm318_vm0, %v3503_v61  ;;  %v1237_v61 = vsel %vm1225_vm3, %v3603_v1, 0.0 }
 0x7d1   : > { %2564 = vmatprep.mubr.msk.f32.mxu1 %vm318_vm0, %v1231_v7  ;;  %2709 = vmatpush3.bf16.msra.mxu1 %v2706_v46 }
 0x7d4   : > { %2565 = vmatmul.mubr.msk.f32.gmra.mrb[4].mxu1 %vm318_vm0, %v3529_v12  ;;  %v1241_v12 = vsel %vm1225_vm3, %v1210_v9, 0.0 }
 0x7d5   : > { %2567 = vmatprep.mubr.msk.f32.mxu1 %vm318_vm0, %v1233_v48 }
 0x7d8   : > { %2568 = vmatmul.mubr.msk.f32.gmra.mrb[6].mxu1 %vm318_vm0, %v3555_v27  ;;  %v1632_v27 = vsel %vm1630_vm4, %v3507_v62, 0.0  ;;  %v1640_v62 = vsel %vm1630_vm4, %v3611_v3, 0.0 }
 0x7d9   : > { %2570 = vmatprep.mubr.msk.f32.mxu1 %vm318_vm0, %v1235_v60 }
 0x7dc   : > { %2571 = vmatmul.mubr.msk.f32.gmra.mrb[8].mxu1 %vm318_vm0, %v3581_v44 }
 0x7dd   : > { %2573 = vmatprep.mubr.msk.f32.mxu1 %vm318_vm0, %v1237_v61 }
 0x7e0   : > { %2574 = vmatmul.mubr.msk.f32.gmra.mrb[10].mxu1 %vm318_vm0, %v3607_v2 }
 0x7e1   : > { %2576 = vmatprep.mubr.msk.f32.mxu1 %vm318_vm0, %v1239_v11 }
 0x7e4   : > { %2577 = vmatmul.mubr.msk.f32.gmra.mrb[12].mxu1 %vm318_vm0, %v1211_v23 }
 0x7e5   : > { %2579 = vmatprep.mubr.msk.f32.mxu1 %vm318_vm0, %v1241_v12 }
 0x7e8   : > { %2580 = vmatmul.mubr.msk.f32.gmra.mrb[14].mxu1 %vm318_vm0, %v1209_v5 }
 0x7e9   : > { %2590 = vmatprep.mubr.msk.f32.mxu1 %vm318_vm0, %v3485_v49  ;;  %v1638_v49 = vsel %vm1630_vm4, %v3585_v45, 0.0 }
 0x7ec   : > { %2591 = vmatmul.mubr.msk.f32.vlgmr.msra.gmra.mrb[0].mxu1 %vm318_vm0, %v1632_v27 }
 0x7ed   : > { %2593 = vmatprep.mubr.msk.f32.mxu1 %vm318_vm0, %v3511_v63  ;;  %v1642_v63 = vsel %vm1630_vm4, %v3631_v24, 0.0 }
 0x7f0   : > { %2594 = vmatmul.mubr.msk.f32.gmra.mrb[2].mxu1 %vm318_vm0, %v1634_v42 }
 0x7f1   : > { %2596 = vmatprep.mubr.msk.f32.mxu1 %vm318_vm0, %v3537_v15  ;;  %v1646_v15 = vsel %vm1630_vm4, %v1628_v35, 0.0 }
 0x7f4   : > { %2597 = vmatmul.mubr.msk.f32.gmra.mrb[4].mxu1 %vm318_vm0, %v1636_v41 }
 0x7f5   : > { %2599 = vmatprep.mubr.msk.f32.mxu1 %vm318_vm0, %v3563_v29 }
 0x7f8   : > { %2600 = vmatmul.mubr.msk.f32.gmra.mrb[6].mxu1 %vm318_vm0, %v1638_v49 }
 0x7f9   : > { %2602 = vmatprep.mubr.msk.f32.mxu1 %vm318_vm0, %v3589_v50 }
 0x7fc   : > { %2603 = vmatmul.mubr.msk.f32.gmra.mrb[8].mxu1 %vm318_vm0, %v1640_v62 }
 0x7fd   : > { %2605 = vmatprep.mubr.msk.f32.mxu1 %vm318_vm0, %v3615_v4 }
 0x800   : > { %2606 = vmatmul.mubr.msk.f32.gmra.mrb[10].mxu1 %vm318_vm0, %v1642_v63 }
 0x801   : > { %2608 = vmatprep.mubr.msk.f32.mxu1 %vm318_vm0, %v3635_v25 }
 0x804   : > { %2609 = vmatmul.mubr.msk.f32.gmra.mrb[12].mxu1 %vm318_vm0, %v1644_v13 }
 0x805   : > { %2611 = vmatprep.mubr.msk.f32.mxu1 %vm318_vm0, %v1613_v43 }
 0x808   : > { %2612 = vmatmul.mubr.msk.f32.gmra.mrb[14].mxu1 %vm318_vm0, %v1646_v15 }
 0x8bf   : > { %v3739_v28 = vpop.f32.mrb[0].mxu1 }
 0x8c0   : > { %v1862_v29 = vsub.f32 0.0, %v3739_v28  ;;  %v3742_v44 = vpop.f32.mrb[1].mxu1 }
 0x8c1   : > { %v1861_v45 = vsub.f32 0.0, %v3742_v44 }
 0x8c2   : > { %v1879_v50 = vmul.f32 1.442695, %v1862_v29 }
 0x8c3   : > { %v1877_v1 = vmul.f32 1.442695, %v1861_v45  ;;  %v3745_v2 = vpop.f32.mrb[2].mxu1 }
 0x8c4   : > { %2889 = vpow2.f32 %v1879_v50  ;;  %v1864_v3 = vsub.f32 0.0, %v3745_v2  ;;  %v3748_v4 = vpop.f32.mrb[3].mxu1 }
 0x8c5   : > { %2891 = vpow2.f32 %v1877_v1  ;;  %v1863_v8 = vsub.f32 0.0, %v3748_v4 }
 0x8c6   : > { %v1883_v10 = vmul.f32 1.442695, %v1864_v3 }
 0x8c7   : > { %v1881_v16 = vmul.f32 1.442695, %v1863_v8  ;;  %v3751_v17 = vpop.f32.mrb[4].mxu1 }
 0x8c8   : > { %2893 = vpow2.f32 %v1883_v10  ;;  %v1866_v18 = vsub.f32 0.0, %v3751_v17  ;;  %v3754_v19 = vpop.f32.mrb[5].mxu1 }
 0x8c9   : > { %2895 = vpow2.f32 %v1881_v16  ;;  %v1865_v20 = vsub.f32 0.0, %v3754_v19 }
 0x8ca   : > { %v1887_v14 = vmul.f32 1.442695, %v1866_v18 }
 0x8cb   : > { %v1885_v21 = vmul.f32 1.442695, %v1865_v20  ;;  %v3757_v22 = vpop.f32.mrb[6].mxu1 }
 0x8cc   : > { %2897 = vpow2.f32 %v1887_v14  ;;  %v1868_v23 = vsub.f32 0.0, %v3757_v22  ;;  %v3760_v24 = vpop.f32.mrb[7].mxu1 }
 0x8cd   : > { %2899 = vpow2.f32 %v1885_v21  ;;  %v1867_v25 = vsub.f32 0.0, %v3760_v24 }
 0x8ce   : > { %v2890_v30 = vpop.eup %2889  ;;  %v1891_v31 = vmul.f32 1.442695, %v1868_v23 }
 0x8cf   : > { %v2892_v32 = vpop.eup %2891  ;;  %v1910_v33 = vadd.f32 1.0, %v2890_v30  ;;  %v1889_v34 = vmul.f32 1.442695, %v1867_v25  ;;  %v3763_v36 = vpop.f32.mrb[8].mxu1 }
 0x8d0   : > { %v1909_v37 = vadd.f32 1.0, %v2892_v32  ;;  %2901 = vpow2.f32 %v1891_v31  ;;  %v1870_v38 = vsub.f32 0.0, %v3763_v36  ;;  %v3766_v39 = vpop.f32.mrb[9].mxu1 }
 0x8d1   : > { %2903 = vrcp.f32 %v1910_v33  ;;  %v1869_v40 = vsub.f32 0.0, %v3766_v39 }
 0x8d2   : > { %v2894_v51 = vpop.eup %2893  ;;  %2905 = vrcp.f32 %v1909_v37  ;;  %v1895_v52 = vmul.f32 1.442695, %v1870_v38 }
 0x8d3   : > { %v2896_v53 = vpop.eup %2895  ;;  %v1912_v54 = vadd.f32 1.0, %v2894_v51  ;;  %2907 = vpow2.f32 %v1889_v34  ;;  %v1893_v55 = vmul.f32 1.442695, %v1869_v40  ;;  %v3769_v56 = vpop.f32.mrb[10].mxu1 }
 0x8d4   : > { %2909 = vpow2.f32 %v1895_v52  ;;  %v1872_v57 = vsub.f32 0.0, %v3769_v56  ;;  %v3772_v58 = vpop.f32.mrb[11].mxu1  ;;  %v1911_v59 = vadd.f32 1.0, %v2896_v53 }
 0x8d5   : > { %2911 = vrcp.f32 %v1912_v54  ;;  %v1871_v35 = vsub.f32 0.0, %v3772_v58 }
 0x8d6   : > { %v2898_v0 = vpop.eup %2897  ;;  %v1899_v9 = vmul.f32 1.442695, %v1872_v57  ;;  %2913 = vpow2.f32 %v1893_v55 }
 0x8d7   : > { %v2900_v5 = vpop.eup %2899  ;;  %v1897_v6 = vmul.f32 1.442695, %v1871_v35  ;;  %v3775_v46 = vpop.f32.mrb[12].mxu1  ;;  %v1914_v48 = vadd.f32 1.0, %v2898_v0 }
 0x8d8   : > { %v1913_v43 = vadd.f32 1.0, %v2900_v5  ;;  %2915 = vpow2.f32 %v1899_v9  ;;  %v1874_v47 = vsub.f32 0.0, %v3775_v46  ;;  %v3778_v7 = vpop.f32.mrb[13].mxu1 }
 0x8d9   : > { %2917 = vrcp.f32 %v1911_v59  ;;  %v1873_v60 = vsub.f32 0.0, %v3778_v7 }
 0x8da   : > { %v2902_v61 = vpop.eup %2901  ;;  %2919 = vrcp.f32 %v1913_v43  ;;  %v1903_v11 = vmul.f32 1.442695, %v1874_v47 }
 0x8db   : > { %v2904_v12 = vpop.eup %2903  ;;  %2921 = vpow2.f32 %v1897_v6  ;;  %v1901_v26 = vmul.f32 1.442695, %v1873_v60  ;;  %v3781_v27 = vpop.f32.mrb[14].mxu1  ;;  %v1916_v63 = vadd.f32 1.0, %v2902_v61 }
 0x8dc   : > { %v2906_v42 = vpop.eup %2905  ;;  %2923 = vpow2.f32 %v1903_v11  ;;  %v1876_v41 = vsub.f32 0.0, %v3781_v27  ;;  %1975 = vrot.lane.b32.xlu0 %v2904_v12, %s3150_s23  ;;  %v3785_v49 = vpop.f32.mrb[15].mxu1 }
 0x8dd   : > { %v2908_v62 = vpop.eup %2907  ;;  %2925 = vrcp.f32 %v1914_v48  ;;  %v1875_v13 = vsub.f32 0.0, %v3785_v49 }
 0x8de   : > { %v2910_v15 = vpop.eup %2909  ;;  %v1915_v29 = vadd.f32 1.0, %v2908_v62  ;;  %2927 = vpow2.f32 %v1901_v26  ;;  %v1907_v45 = vmul.f32 1.442695, %v1876_v41 }
 0x8df   : > { %v2912_v50 = vpop.eup %2911  ;;  %v1905_v1 = vmul.f32 1.442695, %v1875_v13  ;;  %v1918_v8 = vadd.f32 1.0, %v2910_v15 }
 0x8e0   : > { %2929 = vrcp.f32 %v1915_v29  ;;  %1973 = vrot.lane.b32.xlu0 %v2906_v42, %s3150_s23  ;;  %1979 = vrot.lane.b32.xlu1 %v2912_v50, %s3150_s23  ;;  %v2914_v3 = vpop.eup %2913 }
 0x8e1   : > { %2931 = vrcp.f32 %v1916_v63  ;;  %v1917_v16 = vadd.f32 1.0, %v2914_v3 }
 0x8e2   : > { %v2916_v10 = vpop.eup %2915  ;;  %2933 = vpow2.f32 %v1907_v45 }
 0x8e3   : > { %v2918_v18 = vpop.eup %2917  ;;  %2935 = vpow2.f32 %v1905_v1  ;;  %v1920_v21 = vadd.f32 1.0, %v2916_v10 }
 0x8e4   : > { %v2920_v20 = vpop.eup %2919  ;;  %2937 = vrcp.f32 %v1917_v16  ;;  %1977 = vrot.lane.b32.xlu1 %v2918_v18, %s3150_s23 }
 0x8e5   : > { %v2922_v14 = vpop.eup %2921  ;;  %2939 = vrcp.f32 %v1918_v8  ;;  %1981 = vrot.lane.b32.xlu0 %v2920_v20, %s3150_s23 }
 0x8e6   : > { %v2924_v23 = vpop.eup %2923  ;;  %v1919_v25 = vadd.f32 1.0, %v2922_v14 }
 0x8e7   : > { %v2926_v30 = vpop.eup %2925  ;;  %v1922_v32 = vadd.f32 1.0, %v2924_v23 }
 0x8e8   : > { %v2928_v31 = vpop.eup %2927  ;;  %2941 = vrcp.f32 %v1919_v25  ;;  %1983 = vrot.lane.b32.xlu1 %v2926_v30, %s3150_s23 }
 0x8e9   : > { %2943 = vrcp.f32 %v1920_v21  ;;  %v1921_v33 = vadd.f32 1.0, %v2928_v31 }
 0x8ea   : > { %v2930_v34 = vpop.eup %2929 }
 0x8eb   : > { %v2932_v37 = vpop.eup %2931  ;;  %2945 = vrcp.f32 %v1921_v33  ;;  %1985 = vrot.lane.b32.xlu0 %v2930_v34, %s3150_s23 }
 0x8ec   : > { %v2934_v38 = vpop.eup %2933  ;;  %1987 = vrot.lane.b32.xlu1 %v2932_v37, %s3150_s23  ;;  %2947 = vrcp.f32 %v1922_v32 }
 0x8ed   : > { %v2936_v40 = vpop.eup %2935  ;;  %v1924_v51 = vadd.f32 1.0, %v2934_v38 }
 0x8ee   : > { %v2938_v52 = vpop.eup %2937  ;;  %v1923_v53 = vadd.f32 1.0, %v2936_v40 }
 0x8ef   : > { %v2940_v54 = vpop.eup %2939  ;;  %1989 = vrot.lane.b32.xlu0 %v2938_v52, %s3150_s23 }
 0x8f0   : > { %2949 = vrcp.f32 %v1923_v53  ;;  %1991 = vrot.lane.b32.xlu1 %v2940_v54, %s3150_s23 }
 0x8f1   : > { %2951 = vrcp.f32 %v1924_v51 }
 0x8f2   : > { %v2942_v55 = vpop.eup %2941 }
 0x8f3   : > { %v2944_v57 = vpop.eup %2943  ;;  %1993 = vrot.lane.b32.xlu0 %v2942_v55, %s3150_s23 }
 0x8f4   : > { %1995 = vrot.lane.b32.xlu1 %v2944_v57, %s3150_s23 }
 0x8f5   : > { %v2946_v59 = vpop.eup %2945 }
 0x8f6   : > { %v2948_v35 = vpop.eup %2947 }
 0x8f7   : > { %1997 = vrot.lane.b32.xlu0 %v2946_v59, %s3150_s23 }
 0x8f8   : > { %1999 = vrot.lane.b32.xlu1 %v2948_v35, %s3150_s23 }
 0x8fa   : > { %v2950_v0 = vpop.eup %2949 }
 0x8fb   : > { %v2952_v9 = vpop.eup %2951  ;;  %2001 = vrot.lane.b32.xlu0 %v2950_v0, %s3150_s23 }
 0x8fc   : > { %2003 = vrot.lane.b32.xlu1 %v2952_v9, %s3150_s23 }
 0x94e   : > { %v1976_v5 = vpop.permute.xlu0 %1975 }
 0x94f   : > { %v2022_v6 = vmul.f32 %v3739_v28, %v1976_v5 }
 0x951   : > { %2038 = vst.msk [vmem:[%s3806_s27 + $0x8] sm:$0xff] %vm318_vm0, %v2022_v6 }
 0x952   : > { %v1974_v43 = vpop.permute.xlu0 %1973  ;;  %v1980_v47 = vpop.permute.xlu1 %1979 }
 0x953   : > { %v2021_v48 = vmul.f32 %v1974_v43, %v3742_v44  ;;  %v2024_v60 = vmul.f32 %v3745_v2, %v1980_v47 }
 0x955   : > { %2037 = vst.msk [vmem:[%s3806_s27] sm:$0xff] %vm318_vm0, %v2021_v48  ;;  %2040 = vst.msk [vmem:[%s3806_s27 + $0x18] sm:$0xff] %vm318_vm0, %v2024_v60 }
 0x956   : > { %v1978_v28 = vpop.permute.xlu1 %1977 }
 0x957   : > { %v2023_v61 = vmul.f32 %v1978_v28, %v3748_v4  ;;  %v1982_v11 = vpop.permute.xlu0 %1981 }
 0x958   : > { %v2025_v12 = vmul.f32 %v1982_v11, %v3754_v19 }
 0x959   : > { %2039 = vst.msk [vmem:[%s3806_s27 + $0x10] sm:$0xff] %vm318_vm0, %v2023_v61 }
 0x95a   : > { %2041 = vst.msk [vmem:[%s3806_s27 + $0x20] sm:$0xff] %vm318_vm0, %v2025_v12  ;;  %v1984_v44 = vpop.permute.xlu1 %1983 }
 0x95b   : > { %v2026_v2 = vmul.f32 %v3751_v17, %v1984_v44 }
 0x95d   : > { %2042 = vst.msk [vmem:[%s3806_s27 + $0x28] sm:$0xff] %vm318_vm0, %v2026_v2  ;;  %v1986_v26 = vpop.permute.xlu0 %1985 }
 0x95e   : > { %v2027_v42 = vmul.f32 %v1986_v26, %v3760_v24  ;;  %v1988_v4 = vpop.permute.xlu1 %1987 }
 0x95f   : > { %v2028_v41 = vmul.f32 %v3757_v22, %v1988_v4 }
 0x960   : > { %2043 = vst.msk [vmem:[%s3806_s27 + $0x30] sm:$0xff] %vm318_vm0, %v2027_v42 }
 0x961   : > { %2044 = vst.msk [vmem:[%s3806_s27 + $0x38] sm:$0xff] %vm318_vm0, %v2028_v41  ;;  %v1990_v19 = vpop.permute.xlu0 %1989 }
 0x962   : > { %v2029_v62 = vmul.f32 %v1990_v19, %v3766_v39  ;;  %v1992_v17 = vpop.permute.xlu1 %1991 }
 0x963   : > { %v2030_v63 = vmul.f32 %v3763_v36, %v1992_v17 }
 0x964   : > { %2045 = vst.msk [vmem:[%s3806_s27 + $0x40] sm:$0xff] %vm318_vm0, %v2029_v62 }
 0x965   : > { %2046 = vst.msk [vmem:[%s3806_s27 + $0x48] sm:$0xff] %vm318_vm0, %v2030_v63  ;;  %v1994_v24 = vpop.permute.xlu0 %1993 }
 0x966   : > { %v2031_v22 = vmul.f32 %v1994_v24, %v3772_v58  ;;  %v1996_v13 = vpop.permute.xlu1 %1995 }
 0x967   : > { %v2032_v15 = vmul.f32 %v3769_v56, %v1996_v13 }
 0x968   : > { %2047 = vst.msk [vmem:[%s3806_s27 + $0x50] sm:$0xff] %vm318_vm0, %v2031_v22 }
 0x969   : > { %2048 = vst.msk [vmem:[%s3806_s27 + $0x58] sm:$0xff] %vm318_vm0, %v2032_v15  ;;  %v1998_v39 = vpop.permute.xlu0 %1997 }
 0x96a   : > { %v2033_v36 = vmul.f32 %v1998_v39, %v3778_v7  ;;  %v2000_v29 = vpop.permute.xlu1 %1999 }
 0x96b   : > { %v2034_v45 = vmul.f32 %v3775_v46, %v2000_v29 }
 0x96c   : > { %2049 = vst.msk [vmem:[%s3806_s27 + $0x60] sm:$0xff] %vm318_vm0, %v2033_v36 }
 0x96d   : > { %2050 = vst.msk [vmem:[%s3806_s27 + $0x68] sm:$0xff] %vm318_vm0, %v2034_v45  ;;  %v2002_v56 = vpop.permute.xlu0 %2001 }
 0x96e   : > { %v2035_v58 = vmul.f32 %v2002_v56, %v3785_v49  ;;  %v2004_v50 = vpop.permute.xlu1 %2003 }
 0x96f   : > { %v2036_v46 = vmul.f32 %v3781_v27, %v2004_v50 }
 0x970   : > { %2051 = vst.msk [vmem:[%s3806_s27 + $0x70] sm:$0xff] %vm318_vm0, %v2035_v58 }
 0x971   : > { %2052 = vst.msk [vmem:[%s3806_s27 + $0x78] sm:$0xff] %vm318_vm0, %v2036_v46 }
 0x972   : > { %3080 = shalt.err (!%p3077_p4)
}
 0x973   : > { %s3081_s11 = scalar_lea.hbm %s3855_s9, 2048  ;;  %s3085_s26 = scalar_lea.hbm %s3910_s5, 8192 }
 0x974   : > { %p3082_p9 = scmp.ne.s32.totalorder %s3855_s9, %s3081_s11  ;;  %p3086_p8 = scmp.lt.u32.totalorder %s3855_s9, %s3910_s5 }
 0x975   : > { %p3087_p12 = scmp.lt.u32.totalorder %s3085_s26, %s3081_s11  ;;  %p3089_p0 = scmp.lt.u32.totalorder %s3081_s11, %s3855_s9 }
 0x976   : > { %p3083_p13 = pnand %p3082_p9, %p3337_p5 }
 0x977   : > { %p3088_p6 = por %p3087_p12, %p3086_p8 }
 0x978   : > { %p3084_p10 = pneg %p3083_p13 }
 0x979   : > { %p3090_p3 = por %p3089_p0, %p3088_p6 }
 0x97b   : > { %p3091_p7 = pnand %p3090_p3, %p3084_p10 }
 0x97d   : > { %3094 = shalt.err (!%p3091_p7)
}
 0x97e   : > { %s3152_s13 = smov 128   ;;  %s3153_s28 = smov 8  }
 0x97f   : > { %2788 = dma.vmem_to_hbm [thread:$0]  (%p3337_p5), %s3857_s16, 2048, %s3855_s9, %s2054_s22, %s3152_s13, %s3152_s13, %s3153_s28  }
 0x980 PF: > { %p2815_p11 = scmp.ge.s32.totalorder %s3141_s21, 2  ;;  %s2082_s12 = sand.u32 1, %s3129_s18  }
 0x981   : > { %p3928_p1 = scmp.ne.s32.totalorder %s3915_s25, 0  ;;  %s2083_s15 = scalar_lea.sflag [#allocation4], %s2082_s12 }
 0x983   : > { %p2805_p2 = pnand %p2815_p11, %p3928_p1 }
 0x985   : > { %3124 = dma.done.wait (!%p2805_p2), %s2083_s15, 2048  }
 0x986   : > { %3126 = vsyncadd (!%p2805_p2), %s2083_s15, 4294965248  ;;  %p20_p4 = scmp.ge.s32.totalorder %s3323_s14, 6   ;;  %s3929_s18 = smov %s3133_s19 }
 0x987   : > { %s3930_s19 = smov %s3137_s20  ;;  %s3931_s20 = smov %s3333_s30 }
 0x988   : > { %s3932_s21 = smov %s3323_s14  ;;  %22 = sbr.rel (!%p20_p4) target bundleno = 7 (0x7), region = 99 }
 0x98f   :  { %2088 = vsyncpa [#allocation3], 1 }
 0x990   :  { %2090 = vsyncpa [#allocation3 + $0x1], 1 }
 0x991   :  { %2091 = vsyncpa [#allocation6], 1 }
 0x992   :  { %2092 = vsyncpa [#allocation9], 1 }
 0x993   :  { %2093 = vsyncpa [#allocation4], 1 }
 0x994   :  { %2095 = vsyncpa [#allocation4 + $0x1], 1 }

</bundles_post_ra>
